<compile_context>
chip_gen: v7x
topology: tpu7x:2x2x1
jax: 0.10.0
libtpu: 0.0.40
codegen_flags: <defaults>
</compile_context>

<pallas_src>
import jax
import jax.numpy as jnp
from jax.experimental import pallas as pl
from jax.experimental.pallas import tpu as pltpu
import numpy as np

_BIG = 3.0e38  # plain Python float -> jaxpr literal (NOT a captured traced constant)


def lisa_net_kernel(xT_ref, adj_ref, w1_ref, scal_ref, out_ref):
    # xT_ref : [C, N]   node features, transposed, already trunc'd (x.long().float())
    # adj_ref: [N, N]   dense symmetric undirected 0/1 adjacency (bfloat16)
    # w1_ref : [C-1, 1] weight of layer-1 lin_1 (torch Linear(C-1, 1))
    # scal_ref (SMEM): [4, 8] per-layer scalars
    #     [lin_a.w, lin_a.b, lin_b.w, lin_b.b, lin_1.b, w_mean, w_max, w_min]
    #     row 0 = LISASchedConv (last 3 unused), rows 1..3 = LISASchedConv2
    # out_ref: [1, N]   flattened result (lane-dense row)
    xT = xT_ref[...]
    adjf = adj_ref[...].astype(jnp.float32)          # 0/1 values are exact in bf16
    N = adjf.shape[0]

    amask = adjf > 0.0                               # [N, N] neighbour mask
    # undirected degree on the MXU: [1,N] @ [N,N] -> [1,N]  (adj is symmetric)
    deg = jnp.dot(jnp.ones((1, N), jnp.float32), adjf,
                  preferred_element_type=jnp.float32)
    has_nb = deg > 0.0
    inv_deg = 1.0 / jnp.maximum(deg, 1.0)

    # ---------------- layer 1: LISASchedConv ----------------
    v0 = xT[0:1, :]                                  # x[:, 0]   -> [1, N]
    feats = xT[1:, :]                                # x[:, 1:]  -> [C-1, N]
    # lin_1 over C-1 = 3 features: VPU multiply + sublane reduce (exact f32)
    naf = jnp.sum(w1_ref[...] * feats, axis=0, keepdims=True) + scal_ref[0, 4]
    res = scal_ref[0, 0] * v0 + scal_ref[0, 1] + naf      # lin_a(ori) + node_attr_factors
    h = scal_ref[0, 2] * res + scal_ref[0, 3]             # lin_b(result)
    side = naf                                            # x[1] carried to next layer

    # ---------------- layers 2-4: LISASchedConv2 ----------------
    for k in range(1, 4):
        aw, ab = scal_ref[k, 0], scal_ref[k, 1]
        bw, bb = scal_ref[k, 2], scal_ref[k, 3]
        l1b = scal_ref[k, 4]
        wmean, wmax, wmin = scal_ref[k, 5], scal_ref[k, 6], scal_ref[k, 7]

        # scatter reduce='sum'/'mean' on the MXU: s[i] = sum_j adj[i,j] * side[j]
        # ([1,N] @ [N,N] is valid because adj is symmetric).
        s_row = jnp.dot(side, adjf, preferred_element_type=jnp.float32)
        mean_row = s_row * inv_deg

        # scatter reduce='max'/'min': tiny [1,N] -> [N,1] transpose, lane-broadcast,
        # masked sublane reduce (result comes back lane-dense thanks to adj symmetry).
        side_col = jnp.transpose(side)                    # [N, 1]
        vmat = jnp.broadcast_to(side_col, (N, N))         # vmat[j, i] = side[j]
        max_row = jnp.max(jnp.where(amask, vmat, -_BIG), axis=0, keepdims=True)
        min_row = jnp.min(jnp.where(amask, vmat, _BIG), axis=0, keepdims=True)
        max_row = jnp.where(has_nb, max_row, 0.0)         # torch_scatter empty fill -> 0
        min_row = jnp.where(has_nb, min_row, 0.0)

        nc = wmean * mean_row + wmax * max_row + wmin * min_row + l1b   # lin_1
        res = aw * h + ab + nc                            # lin_a(ori) + neighbor_change
        h = bw * res + bb                                 # lin_b(result)
        side = nc

    out_ref[...] = h                                      # [1, N]


def net_forward(x, edge_index, params):
    """x: [N, C] float32; edge_index: [2, E] int32 -> flattened [N] float32."""
    N, C = x.shape
    w1, scal = params
    src, dst = edge_index[0], edge_index[1]
    # to_undirected -> dense symmetric 0/1 adjacency; bf16 halves HBM/VMEM bytes.
    adj = jnp.zeros((N, N), jnp.float32).at[dst, src].set(1.0)
    adj = jnp.maximum(adj, adj.T).astype(jnp.bfloat16)
    # x.long().float() (trunc toward zero) + layout plumbing to [C, N] (nodes on lanes)
    xT = jnp.trunc(jnp.asarray(x, jnp.float32)).T

    out = pl.pallas_call(
        lisa_net_kernel,
        out_shape=jax.ShapeDtypeStruct((1, N), jnp.float32),
        in_specs=[
            pl.BlockSpec(memory_space=pltpu.MemorySpace.VMEM),   # xT   [C, N]
            pl.BlockSpec(memory_space=pltpu.MemorySpace.VMEM),   # adj  [N, N] bf16
            pl.BlockSpec(memory_space=pltpu.MemorySpace.VMEM),   # w1   [C-1, 1]
            pl.BlockSpec(memory_space=pltpu.MemorySpace.SMEM),   # scal [4, 8]
        ],
        out_specs=pl.BlockSpec(memory_space=pltpu.MemorySpace.VMEM),
        compiler_params=pltpu.CompilerParams(vmem_limit_bytes=32 * 1024 * 1024),
    )(xT, adj, w1, scal)
    return out.reshape(-1)                                # torch.flatten(x[0])


def init_params(key, in_channels):
    """Deterministic init mimicking torch Linear reset (uniform +-1/sqrt(fan_in))."""
    ks = jax.random.split(key, 8)

    def u(k, shape, fan_in):
        bound = 1.0 / np.sqrt(fan_in)
        return jax.random.uniform(k, shape, jnp.float32, -bound, bound)

    w1 = u(ks[0], (in_channels - 1, 1), in_channels - 1)
    scal = np.zeros((4, 8), np.float32)
    # layer 1 (LISASchedConv)
    scal[0, 0:2] = np.asarray(u(ks[1], (2,), 1))          # lin_a (w, b)
    scal[0, 2:4] = np.asarray(u(ks[2], (2,), 1))          # lin_b (w, b)
    scal[0, 4] = float(np.asarray(u(ks[3], (1,), in_channels - 1))[0])  # lin_1 bias
    # layers 2-4 (LISASchedConv2)
    for k in range(3):
        kk = jax.random.split(ks[4 + k], 4)
        scal[k + 1, 0:2] = np.asarray(u(kk[0], (2,), 1))  # lin_a
        scal[k + 1, 2:4] = np.asarray(u(kk[1], (2,), 1))  # lin_b
        scal[k + 1, 4] = float(np.asarray(u(kk[2], (1,), 3))[0])   # lin_1 bias
        scal[k + 1, 5:8] = np.asarray(u(kk[3], (3,), 3))  # lin_1 weights (mean,max,min)
    return w1, jnp.asarray(scal)


def net_reference(x, edge_index, params):
    """Pure-JAX replica of Net.forward for verification."""
    w1, scal = params
    N = x.shape[0]
    x = jnp.trunc(jnp.asarray(x, jnp.float32))
    src, dst = edge_index[0], edge_index[1]
    adj = jnp.zeros((N, N), jnp.float32).at[dst, src].set(1.0)
    adj = jnp.maximum(adj, adj.T)
    v0 = x[:, 0:1]
    naf = jnp.sum(x[:, 1:] * w1.reshape(1, -1), axis=1, keepdims=True) + scal[0, 4]
    h = scal[0, 2] * (scal[0, 0] * v0 + scal[0, 1] + naf) + scal[0, 3]
    side = naf
    deg = adj.sum(1, keepdims=True)
    amask = adj > 0
    for k in range(3):
        vals = side.reshape(1, -1)
        s = jnp.where(amask, vals, 0.0).sum(1, keepdims=True)
        mean = s / jnp.maximum(deg, 1.0)
        mx = jnp.where(deg > 0, jnp.where(amask, vals, -_BIG).max(1, keepdims=True), 0.0)
        mn = jnp.where(deg > 0, jnp.where(amask, vals, _BIG).min(1, keepdims=True), 0.0)
        nc = scal[k + 1, 5] * mean + scal[k + 1, 6] * mx + scal[k + 1, 7] * mn + scal[k + 1, 4]
        h = scal[k + 1, 2] * (scal[k + 1, 0] * h + scal[k + 1, 1] + nc) + scal[k + 1, 3]
        side = nc
    return h.reshape(-1)


if __name__ == "__main__":
    N, C = 128, 4                       # 128 nodes (lane-dense), in_channels = 4
    key = jax.random.PRNGKey(0)
    kx, kp, ke1, ke2 = jax.random.split(key, 4)
    x = jax.random.uniform(kx, (N, C), jnp.float32, minval=-3.0, maxval=8.0)

    # directed ring + random chords; every node appears as a target, so the torch
    # scatter's implicit dim_size equals N (as the original module assumes).
    ring = jnp.arange(N, dtype=jnp.int32)
    extra_src = jax.random.randint(ke1, (64,), 0, N, dtype=jnp.int32)
    extra_off = jax.random.randint(ke2, (64,), 1, N, dtype=jnp.int32)
    edge_index = jnp.stack([
        jnp.concatenate([ring, extra_src]),
        jnp.concatenate([(ring + 1) % N, (extra_src + extra_off) % N]),
    ]).astype(jnp.int32)

    params = init_params(kp, C)

    out = net_forward(x, edge_index, params)
    out = jax.block_until_ready(out)

    ref = net_reference(x, edge_index, params)
    assert out.shape == (N,)
    # Tolerance leaves headroom for a possible reduced-precision (bf16-pass) MXU path
    # on the f32 neighbour mat-vec; semantic errors would be orders of magnitude larger.
    np.testing.assert_allclose(np.asarray(out), np.asarray(ref), rtol=1e-2, atol=1e-2)
    print("KERNEL_OK")
</pallas_src>

<mosaic_0001>
module attributes {stable_mosaic.version = 11 : i64} {
  func.func @lisa_net_kernel(%arg0: memref<4x128xf32, #tpu.memory_space<vmem>>, %arg1: memref<128x128xbf16, #tpu.memory_space<vmem>>, %arg2: memref<3x1xf32, #tpu.memory_space<vmem>>, %arg3: memref<4x8xf32, #tpu.memory_space<smem>>, %arg4: memref<1x128xf32, #tpu.memory_space<vmem>>) attributes {dimension_semantics = [], scalar_prefetch = 0 : i64, scratch_operands = 0 : i64, tpu.core_type = #tpu.core_type<tc>} {
    %c0 = arith.constant 0 : index
    %c0_0 = arith.constant 0 : index
    %0 = vector.load %arg0[%c0, %c0_0] : memref<4x128xf32, #tpu.memory_space<vmem>>, vector<4x128xf32>
    %c0_1 = arith.constant 0 : index
    %c0_2 = arith.constant 0 : index
    %1 = vector.load %arg1[%c0_1, %c0_2] : memref<128x128xbf16, #tpu.memory_space<vmem>>, vector<128x128xbf16>
    %2 = arith.extf %1 : vector<128x128xbf16> to vector<128x128xf32>
    %cst = arith.constant 0.000000e+00 : f32
    %3 = vector.broadcast %cst : f32 to vector<128x128xf32>
    %4 = arith.cmpf ogt, %2, %3 : vector<128x128xf32>
    %cst_3 = arith.constant 1.000000e+00 : f32
    %5 = vector.broadcast %cst_3 : f32 to vector<1x128xf32>
    %cst_4 = arith.constant dense<0.000000e+00> : vector<1x128xf32>
    %6 = tpu.matmul %5, %2, %cst_4 {dimension_numbers = #tpu.dot_dimension_numbers<[1], [0], [0], [1], [0, 0, 1, 1], [], []>} : vector<1x128xf32>, vector<128x128xf32>, vector<1x128xf32> -> vector<1x128xf32>
    %cst_5 = arith.constant 0.000000e+00 : f32
    %7 = vector.broadcast %cst_5 : f32 to vector<1x128xf32>
    %8 = arith.cmpf ogt, %6, %7 : vector<1x128xf32>
    %cst_6 = arith.constant 1.000000e+00 : f32
    %9 = vector.broadcast %cst_6 : f32 to vector<1x128xf32>
    %10 = arith.maximumf %6, %9 : vector<1x128xf32>
    %cst_7 = arith.constant 1.000000e+00 : f32
    %11 = vector.broadcast %cst_7 : f32 to vector<1x128xf32>
    %12 = arith.divf %11, %10 : vector<1x128xf32>
    %13 = vector.extract_strided_slice %0 {offsets = [0, 0], sizes = [1, 128], strides = [1, 1]} : vector<4x128xf32> to vector<1x128xf32>
    %14 = vector.extract_strided_slice %0 {offsets = [1, 0], sizes = [3, 128], strides = [1, 1]} : vector<4x128xf32> to vector<3x128xf32>
    %c0_8 = arith.constant 0 : index
    %c0_9 = arith.constant 0 : index
    %15 = vector.load %arg2[%c0_8, %c0_9] : memref<3x1xf32, #tpu.memory_space<vmem>>, vector<3x1xf32>
    %16 = vector.broadcast %15 : vector<3x1xf32> to vector<3x128xf32>
    %17 = arith.mulf %16, %14 : vector<3x128xf32>
    %cst_10 = arith.constant dense<0.000000e+00> : vector<128xf32>
    %18 = vector.multi_reduction <add>, %17, %cst_10 [0] : vector<3x128xf32> to vector<128xf32>
    %19 = vector.shape_cast %18 : vector<128xf32> to vector<1x128xf32>
    %c0_11 = arith.constant 0 : index
    %c4 = arith.constant 4 : index
    %20 = memref.load %arg3[%c0_11, %c4] : memref<4x8xf32, #tpu.memory_space<smem>>
    %21 = vector.broadcast %20 : f32 to vector<1x128xf32>
    %22 = arith.addf %19, %21 : vector<1x128xf32>
    %c0_12 = arith.constant 0 : index
    %c0_13 = arith.constant 0 : index
    %23 = memref.load %arg3[%c0_12, %c0_13] : memref<4x8xf32, #tpu.memory_space<smem>>
    %24 = vector.broadcast %23 : f32 to vector<1x128xf32>
    %25 = arith.mulf %24, %13 : vector<1x128xf32>
    %c0_14 = arith.constant 0 : index
    %c1 = arith.constant 1 : index
    %26 = memref.load %arg3[%c0_14, %c1] : memref<4x8xf32, #tpu.memory_space<smem>>
    %27 = vector.broadcast %26 : f32 to vector<1x128xf32>
    %28 = arith.addf %25, %27 : vector<1x128xf32>
    %29 = arith.addf %28, %22 : vector<1x128xf32>
    %c0_15 = arith.constant 0 : index
    %c2 = arith.constant 2 : index
    %30 = memref.load %arg3[%c0_15, %c2] : memref<4x8xf32, #tpu.memory_space<smem>>
    %31 = vector.broadcast %30 : f32 to vector<1x128xf32>
    %32 = arith.mulf %31, %29 : vector<1x128xf32>
    %c0_16 = arith.constant 0 : index
    %c3 = arith.constant 3 : index
    %33 = memref.load %arg3[%c0_16, %c3] : memref<4x8xf32, #tpu.memory_space<smem>>
    %34 = vector.broadcast %33 : f32 to vector<1x128xf32>
    %35 = arith.addf %32, %34 : vector<1x128xf32>
    %c1_17 = arith.constant 1 : index
    %c0_18 = arith.constant 0 : index
    %36 = memref.load %arg3[%c1_17, %c0_18] : memref<4x8xf32, #tpu.memory_space<smem>>
    %c1_19 = arith.constant 1 : index
    %c1_20 = arith.constant 1 : index
    %37 = memref.load %arg3[%c1_19, %c1_20] : memref<4x8xf32, #tpu.memory_space<smem>>
    %c1_21 = arith.constant 1 : index
    %c2_22 = arith.constant 2 : index
    %38 = memref.load %arg3[%c1_21, %c2_22] : memref<4x8xf32, #tpu.memory_space<smem>>
    %c1_23 = arith.constant 1 : index
    %c3_24 = arith.constant 3 : index
    %39 = memref.load %arg3[%c1_23, %c3_24] : memref<4x8xf32, #tpu.memory_space<smem>>
    %c1_25 = arith.constant 1 : index
    %c4_26 = arith.constant 4 : index
    %40 = memref.load %arg3[%c1_25, %c4_26] : memref<4x8xf32, #tpu.memory_space<smem>>
    %c1_27 = arith.constant 1 : index
    %c5 = arith.constant 5 : index
    %41 = memref.load %arg3[%c1_27, %c5] : memref<4x8xf32, #tpu.memory_space<smem>>
    %c1_28 = arith.constant 1 : index
    %c6 = arith.constant 6 : index
    %42 = memref.load %arg3[%c1_28, %c6] : memref<4x8xf32, #tpu.memory_space<smem>>
    %c1_29 = arith.constant 1 : index
    %c7 = arith.constant 7 : index
    %43 = memref.load %arg3[%c1_29, %c7] : memref<4x8xf32, #tpu.memory_space<smem>>
    %cst_30 = arith.constant dense<0.000000e+00> : vector<1x128xf32>
    %44 = tpu.matmul %22, %2, %cst_30 {dimension_numbers = #tpu.dot_dimension_numbers<[1], [0], [0], [1], [0, 0, 1, 1], [], []>} : vector<1x128xf32>, vector<128x128xf32>, vector<1x128xf32> -> vector<1x128xf32>
    %45 = arith.mulf %44, %12 : vector<1x128xf32>
    %46 = tpu.transpose %22, [1, 0] : vector<1x128xf32> -> vector<128x1xf32>
    %47 = vector.shape_cast %46 : vector<128x1xf32> to vector<128x1xf32>
    %48 = vector.broadcast %47 : vector<128x1xf32> to vector<128x128xf32>
    %cst_31 = arith.constant -3.000000e+38 : f32
    %49 = vector.broadcast %cst_31 : f32 to vector<128x128xf32>
    %50 = arith.select %4, %48, %49 : vector<128x128xi1>, vector<128x128xf32>
    %cst_32 = arith.constant dense<0xFF800000> : vector<128xf32>
    %51 = vector.multi_reduction <maximumf>, %50, %cst_32 [0] : vector<128x128xf32> to vector<128xf32>
    %52 = vector.shape_cast %51 : vector<128xf32> to vector<1x128xf32>
    %cst_33 = arith.constant 3.000000e+38 : f32
    %53 = vector.broadcast %cst_33 : f32 to vector<128x128xf32>
    %54 = arith.select %4, %48, %53 : vector<128x128xi1>, vector<128x128xf32>
    %cst_34 = arith.constant dense<0x7F800000> : vector<128xf32>
    %55 = vector.multi_reduction <minimumf>, %54, %cst_34 [0] : vector<128x128xf32> to vector<128xf32>
    %56 = vector.shape_cast %55 : vector<128xf32> to vector<1x128xf32>
    %cst_35 = arith.constant 0.000000e+00 : f32
    %57 = vector.broadcast %cst_35 : f32 to vector<1x128xf32>
    %58 = arith.select %8, %52, %57 : vector<1x128xi1>, vector<1x128xf32>
    %cst_36 = arith.constant 0.000000e+00 : f32
    %59 = vector.broadcast %cst_36 : f32 to vector<1x128xf32>
    %60 = arith.select %8, %56, %59 : vector<1x128xi1>, vector<1x128xf32>
    %61 = vector.broadcast %41 : f32 to vector<1x128xf32>
    %62 = arith.mulf %61, %45 : vector<1x128xf32>
    %63 = vector.broadcast %42 : f32 to vector<1x128xf32>
    %64 = arith.mulf %63, %58 : vector<1x128xf32>
    %65 = arith.addf %62, %64 : vector<1x128xf32>
    %66 = vector.broadcast %43 : f32 to vector<1x128xf32>
    %67 = arith.mulf %66, %60 : vector<1x128xf32>
    %68 = arith.addf %65, %67 : vector<1x128xf32>
    %69 = vector.broadcast %40 : f32 to vector<1x128xf32>
    %70 = arith.addf %68, %69 : vector<1x128xf32>
    %71 = vector.broadcast %36 : f32 to vector<1x128xf32>
    %72 = arith.mulf %71, %35 : vector<1x128xf32>
    %73 = vector.broadcast %37 : f32 to vector<1x128xf32>
    %74 = arith.addf %72, %73 : vector<1x128xf32>
    %75 = arith.addf %74, %70 : vector<1x128xf32>
    %76 = vector.broadcast %38 : f32 to vector<1x128xf32>
    %77 = arith.mulf %76, %75 : vector<1x128xf32>
    %78 = vector.broadcast %39 : f32 to vector<1x128xf32>
    %79 = arith.addf %77, %78 : vector<1x128xf32>
    %c2_37 = arith.constant 2 : index
    %c0_38 = arith.constant 0 : index
    %80 = memref.load %arg3[%c2_37, %c0_38] : memref<4x8xf32, #tpu.memory_space<smem>>
    %c2_39 = arith.constant 2 : index
    %c1_40 = arith.constant 1 : index
    %81 = memref.load %arg3[%c2_39, %c1_40] : memref<4x8xf32, #tpu.memory_space<smem>>
    %c2_41 = arith.constant 2 : index
    %c2_42 = arith.constant 2 : index
    %82 = memref.load %arg3[%c2_41, %c2_42] : memref<4x8xf32, #tpu.memory_space<smem>>
    %c2_43 = arith.constant 2 : index
    %c3_44 = arith.constant 3 : index
    %83 = memref.load %arg3[%c2_43, %c3_44] : memref<4x8xf32, #tpu.memory_space<smem>>
    %c2_45 = arith.constant 2 : index
    %c4_46 = arith.constant 4 : index
    %84 = memref.load %arg3[%c2_45, %c4_46] : memref<4x8xf32, #tpu.memory_space<smem>>
    %c2_47 = arith.constant 2 : index
    %c5_48 = arith.constant 5 : index
    %85 = memref.load %arg3[%c2_47, %c5_48] : memref<4x8xf32, #tpu.memory_space<smem>>
    %c2_49 = arith.constant 2 : index
    %c6_50 = arith.constant 6 : index
    %86 = memref.load %arg3[%c2_49, %c6_50] : memref<4x8xf32, #tpu.memory_space<smem>>
    %c2_51 = arith.constant 2 : index
    %c7_52 = arith.constant 7 : index
    %87 = memref.load %arg3[%c2_51, %c7_52] : memref<4x8xf32, #tpu.memory_space<smem>>
    %cst_53 = arith.constant dense<0.000000e+00> : vector<1x128xf32>
    %88 = tpu.matmul %70, %2, %cst_53 {dimension_numbers = #tpu.dot_dimension_numbers<[1], [0], [0], [1], [0, 0, 1, 1], [], []>} : vector<1x128xf32>, vector<128x128xf32>, vector<1x128xf32> -> vector<1x128xf32>
    %89 = arith.mulf %88, %12 : vector<1x128xf32>
    %90 = tpu.transpose %70, [1, 0] : vector<1x128xf32> -> vector<128x1xf32>
    %91 = vector.shape_cast %90 : vector<128x1xf32> to vector<128x1xf32>
    %92 = vector.broadcast %91 : vector<128x1xf32> to vector<128x128xf32>
    %cst_54 = arith.constant -3.000000e+38 : f32
    %93 = vector.broadcast %cst_54 : f32 to vector<128x128xf32>
    %94 = arith.select %4, %92, %93 : vector<128x128xi1>, vector<128x128xf32>
    %cst_55 = arith.constant dense<0xFF800000> : vector<128xf32>
    %95 = vector.multi_reduction <maximumf>, %94, %cst_55 [0] : vector<128x128xf32> to vector<128xf32>
    %96 = vector.shape_cast %95 : vector<128xf32> to vector<1x128xf32>
    %cst_56 = arith.constant 3.000000e+38 : f32
    %97 = vector.broadcast %cst_56 : f32 to vector<128x128xf32>
    %98 = arith.select %4, %92, %97 : vector<128x128xi1>, vector<128x128xf32>
    %cst_57 = arith.constant dense<0x7F800000> : vector<128xf32>
    %99 = vector.multi_reduction <minimumf>, %98, %cst_57 [0] : vector<128x128xf32> to vector<128xf32>
    %100 = vector.shape_cast %99 : vector<128xf32> to vector<1x128xf32>
    %cst_58 = arith.constant 0.000000e+00 : f32
    %101 = vector.broadcast %cst_58 : f32 to vector<1x128xf32>
    %102 = arith.select %8, %96, %101 : vector<1x128xi1>, vector<1x128xf32>
    %cst_59 = arith.constant 0.000000e+00 : f32
    %103 = vector.broadcast %cst_59 : f32 to vector<1x128xf32>
    %104 = arith.select %8, %100, %103 : vector<1x128xi1>, vector<1x128xf32>
    %105 = vector.broadcast %85 : f32 to vector<1x128xf32>
    %106 = arith.mulf %105, %89 : vector<1x128xf32>
    %107 = vector.broadcast %86 : f32 to vector<1x128xf32>
    %108 = arith.mulf %107, %102 : vector<1x128xf32>
    %109 = arith.addf %106, %108 : vector<1x128xf32>
    %110 = vector.broadcast %87 : f32 to vector<1x128xf32>
    %111 = arith.mulf %110, %104 : vector<1x128xf32>
    %112 = arith.addf %109, %111 : vector<1x128xf32>
    %113 = vector.broadcast %84 : f32 to vector<1x128xf32>
    %114 = arith.addf %112, %113 : vector<1x128xf32>
    %115 = vector.broadcast %80 : f32 to vector<1x128xf32>
    %116 = arith.mulf %115, %79 : vector<1x128xf32>
    %117 = vector.broadcast %81 : f32 to vector<1x128xf32>
    %118 = arith.addf %116, %117 : vector<1x128xf32>
    %119 = arith.addf %118, %114 : vector<1x128xf32>
    %120 = vector.broadcast %82 : f32 to vector<1x128xf32>
    %121 = arith.mulf %120, %119 : vector<1x128xf32>
    %122 = vector.broadcast %83 : f32 to vector<1x128xf32>
    %123 = arith.addf %121, %122 : vector<1x128xf32>
    %c3_60 = arith.constant 3 : index
    %c0_61 = arith.constant 0 : index
    %124 = memref.load %arg3[%c3_60, %c0_61] : memref<4x8xf32, #tpu.memory_space<smem>>
    %c3_62 = arith.constant 3 : index
    %c1_63 = arith.constant 1 : index
    %125 = memref.load %arg3[%c3_62, %c1_63] : memref<4x8xf32, #tpu.memory_space<smem>>
    %c3_64 = arith.constant 3 : index
    %c2_65 = arith.constant 2 : index
    %126 = memref.load %arg3[%c3_64, %c2_65] : memref<4x8xf32, #tpu.memory_space<smem>>
    %c3_66 = arith.constant 3 : index
    %c3_67 = arith.constant 3 : index
    %127 = memref.load %arg3[%c3_66, %c3_67] : memref<4x8xf32, #tpu.memory_space<smem>>
    %c3_68 = arith.constant 3 : index
    %c4_69 = arith.constant 4 : index
    %128 = memref.load %arg3[%c3_68, %c4_69] : memref<4x8xf32, #tpu.memory_space<smem>>
    %c3_70 = arith.constant 3 : index
    %c5_71 = arith.constant 5 : index
    %129 = memref.load %arg3[%c3_70, %c5_71] : memref<4x8xf32, #tpu.memory_space<smem>>
    %c3_72 = arith.constant 3 : index
    %c6_73 = arith.constant 6 : index
    %130 = memref.load %arg3[%c3_72, %c6_73] : memref<4x8xf32, #tpu.memory_space<smem>>
    %c3_74 = arith.constant 3 : index
    %c7_75 = arith.constant 7 : index
    %131 = memref.load %arg3[%c3_74, %c7_75] : memref<4x8xf32, #tpu.memory_space<smem>>
    %cst_76 = arith.constant dense<0.000000e+00> : vector<1x128xf32>
    %132 = tpu.matmul %114, %2, %cst_76 {dimension_numbers = #tpu.dot_dimension_numbers<[1], [0], [0], [1], [0, 0, 1, 1], [], []>} : vector<1x128xf32>, vector<128x128xf32>, vector<1x128xf32> -> vector<1x128xf32>
    %133 = arith.mulf %132, %12 : vector<1x128xf32>
    %134 = tpu.transpose %114, [1, 0] : vector<1x128xf32> -> vector<128x1xf32>
    %135 = vector.shape_cast %134 : vector<128x1xf32> to vector<128x1xf32>
    %136 = vector.broadcast %135 : vector<128x1xf32> to vector<128x128xf32>
    %cst_77 = arith.constant -3.000000e+38 : f32
    %137 = vector.broadcast %cst_77 : f32 to vector<128x128xf32>
    %138 = arith.select %4, %136, %137 : vector<128x128xi1>, vector<128x128xf32>
    %cst_78 = arith.constant dense<0xFF800000> : vector<128xf32>
    %139 = vector.multi_reduction <maximumf>, %138, %cst_78 [0] : vector<128x128xf32> to vector<128xf32>
    %140 = vector.shape_cast %139 : vector<128xf32> to vector<1x128xf32>
    %cst_79 = arith.constant 3.000000e+38 : f32
    %141 = vector.broadcast %cst_79 : f32 to vector<128x128xf32>
    %142 = arith.select %4, %136, %141 : vector<128x128xi1>, vector<128x128xf32>
    %cst_80 = arith.constant dense<0x7F800000> : vector<128xf32>
    %143 = vector.multi_reduction <minimumf>, %142, %cst_80 [0] : vector<128x128xf32> to vector<128xf32>
    %144 = vector.shape_cast %143 : vector<128xf32> to vector<1x128xf32>
    %cst_81 = arith.constant 0.000000e+00 : f32
    %145 = vector.broadcast %cst_81 : f32 to vector<1x128xf32>
    %146 = arith.select %8, %140, %145 : vector<1x128xi1>, vector<1x128xf32>
    %cst_82 = arith.constant 0.000000e+00 : f32
    %147 = vector.broadcast %cst_82 : f32 to vector<1x128xf32>
    %148 = arith.select %8, %144, %147 : vector<1x128xi1>, vector<1x128xf32>
    %149 = vector.broadcast %129 : f32 to vector<1x128xf32>
    %150 = arith.mulf %149, %133 : vector<1x128xf32>
    %151 = vector.broadcast %130 : f32 to vector<1x128xf32>
    %152 = arith.mulf %151, %146 : vector<1x128xf32>
    %153 = arith.addf %150, %152 : vector<1x128xf32>
    %154 = vector.broadcast %131 : f32 to vector<1x128xf32>
    %155 = arith.mulf %154, %148 : vector<1x128xf32>
    %156 = arith.addf %153, %155 : vector<1x128xf32>
    %157 = vector.broadcast %128 : f32 to vector<1x128xf32>
    %158 = arith.addf %156, %157 : vector<1x128xf32>
    %159 = vector.broadcast %124 : f32 to vector<1x128xf32>
    %160 = arith.mulf %159, %123 : vector<1x128xf32>
    %161 = vector.broadcast %125 : f32 to vector<1x128xf32>
    %162 = arith.addf %160, %161 : vector<1x128xf32>
    %163 = arith.addf %162, %158 : vector<1x128xf32>
    %164 = vector.broadcast %126 : f32 to vector<1x128xf32>
    %165 = arith.mulf %164, %163 : vector<1x128xf32>
    %166 = vector.broadcast %127 : f32 to vector<1x128xf32>
    %167 = arith.addf %165, %166 : vector<1x128xf32>
    %c0_83 = arith.constant 0 : index
    %c0_84 = arith.constant 0 : index
    %168 = vector.load %arg4[%c0_83, %c0_84] : memref<1x128xf32, #tpu.memory_space<vmem>>, vector<1x128xf32>
    tpu.vector_store %arg4[%c0_83, %c0_84], %167 {strides = array<i32>} : memref<1x128xf32, #tpu.memory_space<vmem>>, vector<1x128xf32>,
    return
  }
}

</mosaic_0001>

<bundles_post_ra>
// kernel: tpu_custom_call.1
= control target key start
LH: loop header
LB: loop body
LE: loop exit
PB: predicated region body
PF: predicated region fallthrough
CT: control target
= control target key end

     0   :  { %9 = vsyncpa [#allocation3], 0  ;;  %s2033_s0 = inlined_call_operand.vmem [shape: f32[4,128], index: 0, kind: input, shape index: {}]   ;;  %s2034_s1 = inlined_call_operand.hbm [shape: bf16[128,128], index: 1, kind: input, shape index: {}]   ;;  %s2035_s2 = inlined_call_operand.vmem [shape: f32[3,1], index: 2, kind: input, shape index: {}]   ;;  %s2036_s3 = inlined_call_operand.vmem [shape: f32[4,8], index: 3, kind: input, shape index: {}]   ;;  %s2037_s4 = inlined_call_operand.hbm [shape: f32[1,128], index: 4, kind: output, shape index: {}]  }
   0x1   :  { %10 = vsyncpa [#allocation5], 0 }
   0x2   :  { %11 = vsyncpa [#allocation4], 0  ;;  %s1524_s15 = smov [#allocation2]   ;;  %s34_s19 = sshll.u32 %s2036_s3, 4  ;;  %s35_s19 = int_to_ptr.vmem [resolvable:$true] %s34_s19 }
   0x3   :  { %s19_s16 = sshll.u32 %s1524_s15, 4  ;;  %s1462_s22 = scalar_lea.hbm %s2034_s1, 1024  ;;  %s20_s16 = int_to_ptr.vmem [resolvable:$true] %s19_s16 }
   0x4   :  { %p1463_p0 = scmp.ne.s32.totalorder %s2034_s1, %s1462_s22  ;;  %p1466_p1 = scmp.lt.u32.totalorder %s1462_s22, %s2034_s1 }
   0x6   :  { %p1468_p2 = pnand %p1466_p1, %p1463_p0 }
   0x8   :  { %1471 = shalt.err (!%p1468_p2)
}
   0x9   :  { %s1472_s27 = scalar_lea.vmem %s20_s16, 1024  ;;  %p1477_p4 = scmp.lt.s32.totalorder %s20_s16, %s20_s16 }
   0xa   :  { %p1473_p3 = scmp.ne.s32.totalorder %s20_s16, %s1472_s27  ;;  %p1478_p5 = scmp.lt.s32.totalorder %s1472_s27, %s1472_s27 }
   0xc   :  { %p1479_p6 = por %p1478_p5, %p1477_p4 }
   0xe   :  { %p1480_p7 = pnand %p1479_p6, %p1473_p3 }
  0x10   :  { %1483 = shalt.err (!%p1480_p7)
}
  0x11   :  { %s1525_s3 = smov 64   ;;  %s1526_s28 = smov 4  }
  0x12   :  { %25 = dma.hbm_to_vmem [thread:$0]  %s2034_s1, 1024, %s20_s16, [#allocation3], %s1525_s3, %s1525_s3, %s1526_s28  }
  0x13   :  { %s1484_s5 = scalar_lea.vmem %s35_s19, 64  ;;  %p1489_p9 = scmp.lt.s32.totalorder %s35_s19, %s35_s19 }
  0x14   :  { %p1485_p8 = scmp.ne.s32.totalorder %s35_s19, %s1484_s5  ;;  %p1490_p10 = scmp.lt.s32.totalorder %s1484_s5, %s1484_s5 }
  0x16   :  { %p1491_p11 = por %p1490_p10, %p1489_p9 }
  0x18   :  { %p1492_p12 = pnand %p1491_p11, %p1485_p8 }
  0x1a   :  { %1495 = shalt.err (!%p1492_p12)
}
  0x1b   :  { %s1527_s6 = smov [#allocation6]  }
  0x1c   :  { %37 = dma.vmem_to_smem %s35_s19, 64, %s1527_s6, [#allocation5]  }
  0x1d   :  { %1518 = dma.done.wait [#allocation3], 1024  }
  0x1e   :  { %1519 = vsyncadd [#allocation3], 4294966272 }
  0x1f   :  { %1520 = dma.done.wait [#allocation5], 64  }
  0x20   :  { %1521 = vsyncadd [#allocation5], 4294967232 }
  0x21   :  { %44 = sfence }
  0x22   :  { %v168_v0 = vld [vmem:[%s2035_s2] sm:$0x7]  ;;  %v1528_v2 = vmov 0   ;;  %v1529_v3 = vmov 0.0|0.0   ;;  %v1582_v4 = vld [vmem:[#allocation2 + $0x8] sm:$0xff]   ;;  %vm1530_vm0 = vmmov 0  }
  0x23   :  { %v1577_v1 = vld [vmem:[#allocation2] sm:$0xff]   ;;  %1458 = vset.pattern.permute.xlu0 %v1528_v2  ;;  %1352 = vmatprep.subr.bf16.mxu0 %v1529_v3  ;;  %v1531_v5 = vmov 0.0   ;;  %v1593_v6 = vld [vmem:[#allocation2 + $0x10] sm:$0xff]   ;;  %v1599_v7 = vld [vmem:[#allocation2 + $0x18] sm:$0xff]   ;;  %v1532_v12 = vmov 1.0   ;;  %s189_s9 = sld [smem:[#allocation6]]  ;;  %v1111_v62 = vunpack.c.l.bf16 %v1582_v4  ;;  %v1112_v63 = vunpack.c.h.bf16 %v1582_v4 }
  0x24   :  { %171 = vperm.xlu0 %1458, %v168_v0   ;;  %1354 = vmatpush3.bf16.msra.mxu0 %v1577_v1  ;;  %v1605_v8 = vld [vmem:[#allocation2 + $0x20] sm:$0xff]   ;;  %v1611_v9 = vld [vmem:[#allocation2 + $0x28] sm:$0xff]   ;;  %v1617_v10 = vld [vmem:[#allocation2 + $0x30] sm:$0xff]   ;;  %vm178_vm1 = vcmask 1042432   ;;  %s1078_s10 = sld [smem:[#allocation6 + $0x1]]  ;;  %s1077_s11 = sld [smem:[#allocation6 + $0x4]]  ;;  %v1107_v60 = vunpack.c.l.bf16 %v1577_v1  ;;  %v1108_v61 = vunpack.c.h.bf16 %v1577_v1 }
  0x25   :  { %1355 = vmatprep.subr.bf16.mxu0 %v1529_v3  ;;  %1376 = vmatprep.subr.bf16.mxu1 %v1529_v3  ;;  %v1623_v11 = vld [vmem:[#allocation2 + $0x38] sm:$0xff]   ;;  %v45_v13 = vld [vmem:[%s2033_s0] sm:$0xf]  ;;  %vm1715_vm4 = vcmp.gt.f32.partialorder %v1111_v62, 0.0  ;;  %vm1719_vm5 = vcmp.gt.f32.partialorder %v1112_v63, 0.0  ;;  %s1079_s0 = sld [smem:[#allocation6 + $0x2]] }
  0x26   :  { %1378 = vmatpush3.bf16.msra.mxu1 %v1577_v1  ;;  %1459 = vset.pattern.permute.xlu1 %v1528_v2  ;;  %v175_v14 = vrot.slane %v45_v13, 1  ;;  %v1115_v2 = vunpack.c.l.bf16 %v1593_v6  ;;  %vm1700_vm2 = vcmp.gt.f32.partialorder %v1107_v60, 0.0  ;;  %vm1711_vm3 = vcmp.gt.f32.partialorder %v1108_v61, 0.0  ;;  %s1080_s12 = sld [smem:[#allocation6 + $0x3]]  ;;  %s1086_s13 = sld [smem:[#allocation6 + $0x85]] }
  0x27   :  { %1379 = vmatprep.subr.bf16.mxu1 %v1529_v3  ;;  %1244 = vmatprep.mubr.msk.f32.mxu0 %vm1530_vm0, %v1531_v5  ;;  %s1087_s14 = sld [smem:[#allocation6 + $0x86]]  ;;  %s1081_s15 = sld [smem:[#allocation6 + $0x80]] }
  0x28   :  { %1357 = vmatpush3.bf16.msra.mxu0 %v1582_v4  ;;  %1279 = vmatprep.mubr.msk.f32.mxu1 %vm1530_vm0, %v1531_v5  ;;  %vm1726_vm6 = vcmp.gt.f32.partialorder %v1115_v2, 0.0  ;;  %s1088_s16 = sld [smem:[#allocation6 + $0x87]]  ;;  %s1082_s17 = sld [smem:[#allocation6 + $0x81]] }
  0x29   :  { %1358 = vmatprep.subr.bf16.mxu0 %v1529_v3  ;;  %v190_v20 = vstv %s189_s9  ;;  %s1085_s18 = sld [smem:[#allocation6 + $0x84]]  ;;  %s1083_s19 = sld [smem:[#allocation6 + $0x82]] }
  0x2a   :  { %1381 = vmatpush3.bf16.msra.mxu1 %v1582_v4  ;;  %v191_v23 = vmul.f32 %v190_v20, %v45_v13  ;;  %v193_v24 = vstv %s1078_s10  ;;  %v187_v26 = vstv %s1077_s11  ;;  %s1084_s20 = sld [smem:[#allocation6 + $0x83]]  ;;  %s1094_s21 = sld [smem:[#allocation6 + $0x105]] }
  0x2b   :  { %1382 = vmatprep.subr.bf16.mxu1 %v1529_v3  ;;  %s1095_s22 = sld [smem:[#allocation6 + $0x106]]  ;;  %s1089_s23 = sld [smem:[#allocation6 + $0x100]] }
  0x2c   :  { %1360 = vmatpush3.bf16.msra.mxu0 %v1593_v6  ;;  %v194_v27 = vadd.f32 %v193_v24, %v191_v23  ;;  %s1096_s24 = sld [smem:[#allocation6 + $0x107]]  ;;  %s1090_s25 = sld [smem:[#allocation6 + $0x101]] }
  0x2d   :  { %1361 = vmatprep.subr.bf16.mxu0 %v1529_v3  ;;  %s1093_s26 = sld [smem:[#allocation6 + $0x104]]  ;;  %s1091_s27 = sld [smem:[#allocation6 + $0x102]] }
  0x2e   :  { %1384 = vmatpush3.bf16.msra.mxu1 %v1593_v6  ;;  %s1092_s3 = sld [smem:[#allocation6 + $0x103]]  ;;  %s1102_s28 = sld [smem:[#allocation6 + $0x185]] }
  0x2f   :  { %1385 = vmatprep.subr.bf16.mxu1 %v1529_v3  ;;  %s1103_s29 = sld [smem:[#allocation6 + $0x186]]  ;;  %s1097_s30 = sld [smem:[#allocation6 + $0x180]] }
  0x30   :  { %1363 = vmatpush3.bf16.msra.mxu0 %v1599_v7  ;;  %s1104_s5 = sld [smem:[#allocation6 + $0x187]]  ;;  %s1098_s6 = sld [smem:[#allocation6 + $0x181]] }
  0x31   :  { %1364 = vmatprep.subr.bf16.mxu0 %v1529_v3  ;;  %s1101_s7 = sld [smem:[#allocation6 + $0x184]]  ;;  %s1099_s8 = sld [smem:[#allocation6 + $0x182]] }
  0x32   :  { %1387 = vmatpush3.bf16.msra.mxu1 %v1599_v7  ;;  %s1100_s1 = sld [smem:[#allocation6 + $0x183]]  ;;  %s1533_s2 = smov [#allocation7]  }
  0x33   :  { %1388 = vmatprep.subr.bf16.mxu1 %v1529_v3  ;;  %s1067_s9 = sshll.u32 %s1533_s2, 4  ;;  %s1068_s9 = int_to_ptr.vmem [resolvable:$true] %s1067_s9 }
  0x34   :  { %1366 = vmatpush3.bf16.msra.mxu0 %v1605_v8  ;;  %s1496_s10 = scalar_lea.vmem %s1068_s9, 16  ;;  %s1500_s11 = scalar_lea.vmem %s1068_s9, 32 }
  0x35   :  { %1367 = vmatprep.subr.bf16.mxu0 %v1529_v3  ;;  %p1497_p13 = scmp.ne.s32.totalorder %s1068_s9, %s1496_s10  ;;  %p1501_p0 = scmp.lt.s32.totalorder %s1068_s9, %s1068_s9 }
  0x36   :  { %1390 = vmatpush3.bf16.msra.mxu1 %v1605_v8  ;;  %p1502_p1 = scmp.lt.s32.totalorder %s1500_s11, %s1496_s10 }
  0x37   :  { %1391 = vmatprep.subr.bf16.mxu1 %v1529_v3 }
  0x38   :  { %1369 = vmatpush3.bf16.msra.mxu0 %v1611_v9  ;;  %p1503_p2 = por %p1502_p1, %p1501_p0 }
  0x39   :  { %1370 = vmatprep.subr.bf16.mxu0 %v1529_v3 }
  0x3a   :  { %1393 = vmatpush3.bf16.msra.mxu1 %v1611_v9  ;;  %p1504_p3 = pnand %p1503_p2, %p1497_p13 }
  0x3b   :  { %1394 = vmatprep.subr.bf16.mxu1 %v1529_v3 }
  0x3c   :  { %1372 = vmatpush3.bf16.msra.mxu0 %v1617_v10 }
  0x3d   :  { %1373 = vmatprep.subr.bf16.mxu0 %v1529_v3 }
  0x3e   :  { %1396 = vmatpush3.bf16.msra.mxu1 %v1617_v10 }
  0x3f   :  { %1397 = vmatprep.subr.bf16.mxu1 %v1529_v3 }
  0x40   :  { %1375 = vmatpush3.bf16.msra.mxu0 %v1623_v11 }
  0x41   :  { %1400 = vmatprep.subr.bf16.mxu0 %v1529_v3 }
  0x42   :  { %1399 = vmatpush3.bf16.msra.mxu1 %v1623_v11 }
  0x43   :  { %1245 = vmatmul.mubr.f32.vlgmr.msra.gmra.mrb[0].mxu0 %v1532_v12  ;;  %1424 = vmatprep.subr.bf16.mxu1 %v1529_v3  ;;  %v1120_v12 = vunpack.c.h.bf16 %v1599_v7 }
  0x44   :  { %1402 = vmatpush3.bf16.msra.mxu0 %v1577_v1  ;;  %1314 = vmatprep.mubr.msk.f32.mxu0 %vm1530_vm0, %v1531_v5 }
  0x45   :  { %1403 = vmatprep.subr.bf16.mxu0 %v1529_v3  ;;  %vm1738_vm9 = vcmp.gt.f32.partialorder %v1120_v12, 0.0 }
  0x48   :  { %1405 = vmatpush3.bf16.msra.mxu0 %v1582_v4 }
  0x49   :  { %1406 = vmatprep.subr.bf16.mxu0 %v1529_v3 }
  0x4c   :  { %1408 = vmatpush3.bf16.msra.mxu0 %v1593_v6 }
  0x4d   :  { %1409 = vmatprep.subr.bf16.mxu0 %v1529_v3 }
  0x50   :  { %1411 = vmatpush3.bf16.msra.mxu0 %v1599_v7 }
  0x51   :  { %1412 = vmatprep.subr.bf16.mxu0 %v1529_v3 }
  0x54   :  { %1414 = vmatpush3.bf16.msra.mxu0 %v1605_v8 }
  0x55   :  { %1415 = vmatprep.subr.bf16.mxu0 %v1529_v3 }
  0x58   :  { %1417 = vmatpush3.bf16.msra.mxu0 %v1611_v9 }
  0x59   :  { %1418 = vmatprep.subr.bf16.mxu0 %v1529_v3 }
  0x5c   :  { %1420 = vmatpush3.bf16.msra.mxu0 %v1617_v10 }
  0x5d   :  { %1421 = vmatprep.subr.bf16.mxu0 %v1529_v3 }
  0x60   :  { %1423 = vmatpush3.bf16.msra.mxu0 %v1623_v11 }
  0xa3   :  { %v172_v15 = vpop.permute.xlu0 %171 }
  0xa4   :  { %v177_v16 = vmul.f32 %v175_v14, %v172_v15  ;;  %v1124_v14 = vunpack.c.h.bf16 %v1605_v8 }
  0xa6   :  { %v179_v17 = vsel %vm178_vm1, %v177_v16, 0.0  ;;  %v1128_v16 = vunpack.c.h.bf16 %v1611_v9  ;;  %vm1746_vm11 = vcmp.gt.f32.partialorder %v1124_v14, 0.0 }
  0xa7   :  { %v180_v18 = vrot.slane %v179_v17, 4 }
  0xa8   :  { %vm1758_vm13 = vcmp.gt.f32.partialorder %v1128_v16, 0.0 }
  0xa9   :  { %v181_v19 = vadd.f32 %v180_v18, %v179_v17  ;;  %v1132_v17 = vunpack.c.h.bf16 %v1617_v10 }
  0xab   :  { %v182_v21 = vrot.slane %v181_v19, 2  ;;  %vm1766_vm15 = vcmp.gt.f32.partialorder %v1132_v17, 0.0 }
  0xad   :  { %v183_v22 = vadd.f32 %v182_v21, %v181_v19 }
  0xaf   :  { %v184_v25 = vrot.slane %v183_v22, 1 }
  0xb1   :  { %v185_v28 = vadd.f32 %v184_v25, %v183_v22 }
  0xb3   :  { %v188_v29 = vadd.f32 %v187_v26, %v185_v28  ;;  %v1136_v26 = vunpack.c.h.bf16 %v1623_v11 }
  0xb5   :  { %281 = vxpose.xlu0.b32.start.end [1/1] (short) %v188_v29, 128  ;;  %v1651_v30 = vadd.f32 %v194_v27, %v188_v29  ;;  %1280 = vmatmul.mubr.f32.vlgmr.msra.gmra.mrb[0].mxu1 %v188_v29  ;;  %vm1799_vm1 = vcmp.gt.f32.partialorder %v1136_v26, 0.0 }
  0xb6   :  { %1426 = vmatpush3.bf16.msra.mxu1 %v1577_v1  ;;  %1349 = vmatprep.mubr.msk.f32.mxu1 %vm1530_vm0, %v1531_v5  ;;  %v1119_v5 = vunpack.c.l.bf16 %v1599_v7  ;;  %v1123_v1 = vunpack.c.l.bf16 %v1605_v8 }
  0xb7   :  { %1427 = vmatprep.subr.bf16.mxu1 %v1529_v3 }
  0xb8   :  { %vm1734_vm8 = vcmp.gt.f32.partialorder %v1119_v5, 0.0  ;;  %vm1742_vm10 = vcmp.gt.f32.partialorder %v1123_v1, 0.0 }
  0xba   :  { %1429 = vmatpush3.bf16.msra.mxu1 %v1582_v4  ;;  %v1127_v4 = vunpack.c.l.bf16 %v1611_v9 }
  0xbb   :  { %1430 = vmatprep.subr.bf16.mxu1 %v1529_v3 }
  0xbc   :  { %vm1750_vm12 = vcmp.gt.f32.partialorder %v1127_v4, 0.0 }
  0xbe   :  { %1432 = vmatpush3.bf16.msra.mxu1 %v1593_v6 }
  0xbf   :  { %1433 = vmatprep.subr.bf16.mxu1 %v1529_v3 }
  0xc2   :  { %1435 = vmatpush3.bf16.msra.mxu1 %v1599_v7 }
  0xc3   :  { %1436 = vmatprep.subr.bf16.mxu1 %v1529_v3 }
  0xc6   :  { %1438 = vmatpush3.bf16.msra.mxu1 %v1605_v8 }
  0xc7   :  { %1439 = vmatprep.subr.bf16.mxu1 %v1529_v3 }
  0xca   :  { %1441 = vmatpush3.bf16.msra.mxu1 %v1611_v9  ;;  %v1135_v9 = vunpack.c.l.bf16 %v1623_v11 }
  0xcb   :  { %1442 = vmatprep.subr.bf16.mxu1 %v1529_v3 }
  0xcc   :  { %vm1779_vm0 = vcmp.gt.f32.partialorder %v1135_v9, 0.0 }
  0xce   :  { %1444 = vmatpush3.bf16.msra.mxu1 %v1617_v10 }
  0xcf   :  { %1445 = vmatprep.subr.bf16.mxu1 %v1529_v3  ;;  %v1116_v3 = vunpack.c.h.bf16 %v1593_v6  ;;  %v1131_v6 = vunpack.c.l.bf16 %v1617_v10 }
  0xd1   :  { %vm1730_vm7 = vcmp.gt.f32.partialorder %v1116_v3, 0.0  ;;  %vm1762_vm14 = vcmp.gt.f32.partialorder %v1131_v6, 0.0 }
  0xd2   :  { %1447 = vmatpush3.bf16.msra.mxu1 %v1623_v11 }
 0x116   :  { %v1670_v31 = vpop.f32.mrb[0].mxu0 }
 0x117   :  { %v1246_v32 = vpop.f32.mrb[1].mxu0  ;;  %v165_v15 = vmax.f32 %v1670_v31, 1.0 }
 0x119   :  { %1460 = vrcp.f32 %v165_v15 }
 0x123   :  { %v1861_v15 = vpop.eup %1460 }
 0x135   :  { %v297_v33 = vpop.trf.xlu0 }
 0x136   :  { %315 = vperm.xlu1 %1459, %v297_v33  }
 0x139   :  { %v298_v34 = vpop.trf.xlu0 }
 0x13a   :  { %320 = vperm.xlu1 %1459, %v298_v34  }
 0x13d   :  { %v299_v35 = vpop.trf.xlu0 }
 0x13e   :  { %325 = vperm.xlu1 %1459, %v299_v35  }
 0x141   :  { %v300_v36 = vpop.trf.xlu0 }
 0x142   :  { %330 = vperm.xlu1 %1459, %v300_v36   ;;  %v2072_v36 = vmov 0 }
 0x143   :  { %v2073_v36 = vsel %vm1779_vm0, 4294967295, %v2072_v36 }
 0x145   :  { %v301_v37 = vpop.trf.xlu0 }
 0x146   :  { %335 = vperm.xlu1 %1459, %v301_v37  }
 0x149   :  { %v302_v38 = vpop.trf.xlu0 }
 0x14a   :  { %340 = vperm.xlu1 %1459, %v302_v38  }
 0x14d   :  { %v303_v39 = vpop.trf.xlu0 }
 0x14e   :  { %345 = vperm.xlu1 %1459, %v303_v39  }
 0x151   :  { %v304_v40 = vpop.trf.xlu0 }
 0x152   :  { %350 = vperm.xlu1 %1459, %v304_v40  }
 0x155   :  { %v305_v41 = vpop.trf.xlu0 }
 0x156   :  { %355 = vperm.xlu1 %1459, %v305_v41  }
 0x159   :  { %v306_v42 = vpop.trf.xlu0 }
 0x15a   :  { %360 = vperm.xlu0 %1458, %v306_v42  }
 0x15d   :  { %v307_v43 = vpop.trf.xlu0 }
 0x15e   :  { %365 = vperm.xlu1 %1459, %v307_v43   ;;  %v2074_v43 = vmov 0 }
 0x15f   :  { %v2075_v43 = vsel %vm1799_vm1, 4294967295, %v2074_v43 }
 0x161   :  { %v308_v44 = vpop.trf.xlu0 }
 0x162   :  { %370 = vperm.xlu1 %1459, %v308_v44  }
 0x165   :  { %v309_v45 = vpop.trf.xlu0 }
 0x166   :  { %375 = vperm.xlu1 %1459, %v309_v45  }
 0x169   :  { %v310_v46 = vpop.trf.xlu0 }
 0x16a   :  { %380 = vperm.xlu1 %1459, %v310_v46  }
 0x16d   :  { %v311_v47 = vpop.trf.xlu0 }
 0x16e   :  { %385 = vperm.xlu1 %1459, %v311_v47  }
 0x171   :  { %v312_v48 = vpop.trf.xlu0 }
 0x172   :  { %390 = vperm.xlu1 %1459, %v312_v48  }
 0x188   :  { %v1672_v49 = vpop.f32.mrb[0].mxu1 }
 0x189   :  { %v1281_v50 = vpop.f32.mrb[1].mxu1 }
 0x1b5   :  { %v1674_v51 = vpop.permute.xlu1 %315 }
 0x1b6   :  { %v393_v27 = vsel %vm1700_vm2, %v1674_v51, -3e+38  ;;  %v430_v11 = vsel %vm1700_vm2, %v1674_v51, 3e+38 }
 0x1b9   :  { %v1676_v52 = vpop.permute.xlu1 %320 }
 0x1ba   :  { %v394_v33 = vsel %vm1711_vm3, %v1676_v52, -3e+38  ;;  %v431_v34 = vsel %vm1711_vm3, %v1676_v52, 3e+38 }
 0x1bd   :  { %v1678_v53 = vpop.permute.xlu1 %325 }
 0x1be   :  { %v395_v37 = vsel %vm1715_vm4, %v1678_v53, -3e+38  ;;  %v432_v38 = vsel %vm1715_vm4, %v1678_v53, 3e+38 }
 0x1c1   :  { %v1680_v54 = vpop.permute.xlu1 %330 }
 0x1c2   :  { %v396_v39 = vsel %vm1719_vm5, %v1680_v54, -3e+38  ;;  %v433_v47 = vsel %vm1719_vm5, %v1680_v54, 3e+38 }
 0x1c5   :  { %v336_v55 = vpop.permute.xlu1 %335 }
 0x1c6   :  { %v397_v40 = vsel %vm1726_vm6, %v336_v55, -3e+38  ;;  %v434_v41 = vsel %vm1726_vm6, %v336_v55, 3e+38 }
 0x1c7   :  { %v409_v53 = vmax.f32 %v393_v27, %v397_v40  ;;  %v446_v55 = vmin.f32 %v430_v11, %v434_v41 }
 0x1c9   :  { %v1682_v56 = vpop.permute.xlu1 %340 }
 0x1ca   :  { %v398_v42 = vsel %vm1730_vm7, %v1682_v56, -3e+38  ;;  %v435_v44 = vsel %vm1730_vm7, %v1682_v56, 3e+38 }
 0x1cb   :  { %v410_v56 = vmax.f32 %v394_v33, %v398_v42  ;;  %v447_v60 = vmin.f32 %v431_v34, %v435_v44 }
 0x1cd   :  { %v1684_v57 = vpop.permute.xlu1 %345 }
 0x1ce   :  { %v399_v45 = vsel %vm1734_vm8, %v1684_v57, -3e+38  ;;  %v436_v46 = vsel %vm1734_vm8, %v1684_v57, 3e+38 }
 0x1cf   :  { %v411_v61 = vmax.f32 %v395_v37, %v399_v45  ;;  %v448_v54 = vmin.f32 %v432_v38, %v436_v46 }
 0x1d1   :  { %v1686_v58 = vpop.permute.xlu1 %350 }
 0x1d2   :  { %v400_v48 = vsel %vm1738_vm9, %v1686_v58, -3e+38  ;;  %v437_v50 = vsel %vm1738_vm9, %v1686_v58, 3e+38 }
 0x1d3   :  { %v412_v63 = vmax.f32 %v396_v39, %v400_v48  ;;  %v449_v2 = vmin.f32 %v433_v47, %v437_v50 }
 0x1d5   :  { %v1688_v59 = vpop.permute.xlu1 %355 }
 0x1d6   :  { %v401_v57 = vsel %vm1742_vm10, %v1688_v59, -3e+38  ;;  %v438_v62 = vsel %vm1742_vm10, %v1688_v59, 3e+38 }
 0x1d7   :  { %v413_v5 = vmax.f32 %v409_v53, %v401_v57  ;;  %v450_v4 = vmin.f32 %v446_v55, %v438_v62 }
 0x1d9   :  { %v361_v51 = vpop.permute.xlu0 %360 }
 0x1da   :  { %v402_v58 = vsel %vm1746_vm11, %v361_v51, -3e+38  ;;  %v439_v3 = vsel %vm1746_vm11, %v361_v51, 3e+38 }
 0x1db   :  { %v414_v9 = vmax.f32 %v410_v56, %v402_v58  ;;  %v451_v26 = vmin.f32 %v447_v60, %v439_v3 }
 0x1dd   :  { %v1694_v0 = vpop.permute.xlu1 %365 }
 0x1de   :  { %v403_v12 = vsel %vm1750_vm12, %v1694_v0, -3e+38  ;;  %v440_v1 = vsel %vm1750_vm12, %v1694_v0, 3e+38 }
 0x1df   :  { %v415_v11 = vmax.f32 %v411_v61, %v403_v12  ;;  %v452_v33 = vmin.f32 %v448_v54, %v440_v1  ;;  %v200_v1 = vstv %s1080_s12 }
 0x1e1   :  { %v1723_v19 = vpop.permute.xlu1 %370 }
 0x1e2   :  { %v404_v59 = vsel %vm1758_vm13, %v1723_v19, -3e+38  ;;  %v441_v16 = vsel %vm1758_vm13, %v1723_v19, 3e+38 }
 0x1e3   :  { %v416_v37 = vmax.f32 %v412_v63, %v404_v59  ;;  %v453_v38 = vmin.f32 %v449_v2, %v441_v16  ;;  %v197_v63 = vstv %s1079_s0  ;;  %v469_v16 = vstv %s1086_s13 }
 0x1e4   :  { %v198_v12 = vmul.f32 %v197_v63, %v1651_v30 }
 0x1e5   :  { %v376_v35 = vpop.permute.xlu1 %375 }
 0x1e6   :  { %v405_v0 = vsel %vm1762_vm14, %v376_v35, -3e+38  ;;  %v442_v27 = vsel %vm1762_vm14, %v376_v35, 3e+38 }
 0x1e7   :  { %v417_v42 = vmax.f32 %v413_v5, %v405_v0  ;;  %v454_v44 = vmin.f32 %v450_v4, %v442_v27  ;;  %v280_v4 = vmul.f32 %v1861_v15, %v1672_v49  ;;  %v474_v27 = vstv %s1088_s16 }
 0x1e9   :  { %v381_v52 = vpop.permute.xlu1 %380 }
 0x1ea   :  { %v406_v6 = vsel %vm1766_vm15, %v381_v52, -3e+38  ;;  %v443_v17 = vsel %vm1766_vm15, %v381_v52, 3e+38 }
 0x1eb   :  { %v418_v39 = vmax.f32 %v414_v9, %v406_v6  ;;  %v455_v40 = vmin.f32 %v451_v26, %v443_v17  ;;  %v471_v9 = vstv %s1087_s14  ;;  %v201_v26 = vadd.f32 %v200_v1, %v198_v12 }
 0x1ed   :  { %v386_v14 = vpop.permute.xlu1 %385  ;;  %v421_v51 = vmax.f32 %v417_v42, %v418_v39  ;;  %v458_v52 = vmin.f32 %v454_v44, %v455_v40  ;;  %v481_v39 = vstv %s1082_s17 }
 0x1ee   :  { %v407_v34 = vsel %vm1779_vm0, %v386_v14, -3e+38  ;;  %v444_v19 = vsel %vm1779_vm0, %v386_v14, 3e+38 }
 0x1ef   :  { %v419_v46 = vmax.f32 %v415_v11, %v407_v34  ;;  %v456_v47 = vmin.f32 %v452_v33, %v444_v19  ;;  %v479_v11 = vstv %s1081_s15  ;;  %v470_v33 = vmul.f32 %v469_v16, %v280_v4 }
 0x1f0   :  { %v480_v49 = vmul.f32 %v479_v11, %v201_v26 }
 0x1f1   :  { %v391_v41 = vpop.permute.xlu1 %390 }
 0x1f2   :  { %v408_v45 = vsel %vm1799_vm1, %v391_v41, -3e+38  ;;  %v445_v35 = vsel %vm1799_vm1, %v391_v41, 3e+38  ;;  %vm2040_vm1 = vcmp.gt.f32.partialorder %v1670_v31, 0.0  ;;  %v482_v42 = vadd.f32 %v481_v39, %v480_v49 }
 0x1f3   :  { %v420_v48 = vmax.f32 %v416_v37, %v408_v45  ;;  %v457_v50 = vmin.f32 %v453_v38, %v445_v35  ;;  %v477_v38 = vstv %s1085_s18 }
 0x1f5   :  { %v422_v53 = vmax.f32 %v419_v46, %v420_v48  ;;  %v459_v55 = vmin.f32 %v456_v47, %v457_v50 }
 0x1f7   :  { %v423_v56 = vmax.f32 %v421_v51, %v422_v53  ;;  %v460_v57 = vmin.f32 %v458_v52, %v459_v55 }
 0x1f9   :  { %v424_v60 = vrot.slane %v423_v56, 4  ;;  %v461_v61 = vrot.slane %v460_v57, 4 }
 0x1fb   :  { %v425_v54 = vmax.f32 %v423_v56, %v424_v60  ;;  %v462_v62 = vmin.f32 %v460_v57, %v461_v61 }
 0x1fd   :  { %v426_v2 = vrot.slane %v425_v54, 2  ;;  %v463_v58 = vrot.slane %v462_v62, 2 }
 0x1ff   :  { %v427_v3 = vmax.f32 %v425_v54, %v426_v2  ;;  %v464_v5 = vmin.f32 %v462_v62, %v463_v58 }
 0x201   :  { %v428_v59 = vrot.slane %v427_v3, 1  ;;  %v465_v14 = vrot.slane %v464_v5, 1 }
 0x203   :  { %v429_v6 = vmax.f32 %v427_v3, %v428_v59  ;;  %v466_v17 = vmin.f32 %v464_v5, %v465_v14 }
 0x205   :  { %v467_v0 = vsel %vm2040_vm1, %v429_v6, 0.0  ;;  %v468_v30 = vsel %vm2040_vm1, %v466_v17, 0.0  ;;  %vm2076_vm1 = vnez %v2075_v43 }
 0x206   :  { %v472_v34 = vmul.f32 %v471_v9, %v467_v0  ;;  %v475_v37 = vmul.f32 %v474_v27, %v468_v30 }
 0x208   :  { %v473_v19 = vadd.f32 %v472_v34, %v470_v33 }
 0x20a   :  { %v476_v40 = vadd.f32 %v475_v37, %v473_v19 }
 0x20c   :  { %v478_v41 = vadd.f32 %v477_v38, %v476_v40 }
 0x20e   :  { %567 = vxpose.xlu1.b32.start.end [1/1] (short) %v478_v41, 128  ;;  %v1871_v44 = vadd.f32 %v482_v42, %v478_v41  ;;  %1315 = vmatmul.mubr.f32.vlgmr.msra.gmra.mrb[2].mxu0 %v478_v41 }
 0x28e   :  { %v583_v45 = vpop.trf.xlu1 }
 0x28f   :  { %601 = vperm.xlu1 %1459, %v583_v45  }
 0x292   :  { %v584_v35 = vpop.trf.xlu1 }
 0x293   :  { %606 = vperm.xlu0 %1458, %v584_v35  }
 0x296   :  { %v585_v46 = vpop.trf.xlu1 }
 0x297   :  { %611 = vperm.xlu0 %1458, %v585_v46  }
 0x29a   :  { %v586_v47 = vpop.trf.xlu1 }
 0x29b   :  { %616 = vperm.xlu0 %1458, %v586_v47  }
 0x29e   :  { %v587_v48 = vpop.trf.xlu1 }
 0x29f   :  { %621 = vperm.xlu0 %1458, %v587_v48  }
 0x2a2   :  { %v588_v50 = vpop.trf.xlu1 }
 0x2a3   :  { %626 = vperm.xlu0 %1458, %v588_v50  }
 0x2a6   :  { %v589_v51 = vpop.trf.xlu1 }
 0x2a7   :  { %631 = vperm.xlu0 %1458, %v589_v51  }
 0x2aa   :  { %v590_v52 = vpop.trf.xlu1 }
 0x2ab   :  { %636 = vperm.xlu0 %1458, %v590_v52  }
 0x2ae   :  { %v591_v53 = vpop.trf.xlu1 }
 0x2af   :  { %641 = vperm.xlu0 %1458, %v591_v53  }
 0x2b2   :  { %v592_v55 = vpop.trf.xlu1 }
 0x2b3   :  { %646 = vperm.xlu0 %1458, %v592_v55  }
 0x2b6   :  { %v593_v56 = vpop.trf.xlu1 }
 0x2b7   :  { %651 = vperm.xlu0 %1458, %v593_v56  }
 0x2ba   :  { %v594_v57 = vpop.trf.xlu1 }
 0x2bb   :  { %656 = vperm.xlu0 %1458, %v594_v57  }
 0x2be   :  { %v595_v60 = vpop.trf.xlu1 }
 0x2bf   :  { %661 = vperm.xlu0 %1458, %v595_v60  }
 0x2c2   :  { %v596_v61 = vpop.trf.xlu1 }
 0x2c3   :  { %666 = vperm.xlu0 %1458, %v596_v61  }
 0x2c6   :  { %v597_v54 = vpop.trf.xlu1 }
 0x2c7   :  { %671 = vperm.xlu0 %1458, %v597_v54  }
 0x2ca   :  { %v598_v62 = vpop.trf.xlu1 }
 0x2cb   :  { %676 = vperm.xlu0 %1458, %v598_v62  }
 0x2e1   :  { %v1873_v63 = vpop.f32.mrb[2].mxu0 }
 0x2e2   :  { %v1316_v2 = vpop.f32.mrb[3].mxu0 }
 0x30e   :  { %v602_v17 = vpop.permute.xlu1 %601 }
 0x30f   :  { %v679_v26 = vsel %vm1700_vm2, %v602_v17, -3e+38  ;;  %v716_v0 = vsel %vm1700_vm2, %v602_v17, 3e+38 }
 0x312   :  { %v607_v58 = vpop.permute.xlu0 %606 }
 0x313   :  { %v680_v30 = vsel %vm1711_vm3, %v607_v58, -3e+38  ;;  %v717_v27 = vsel %vm1711_vm3, %v607_v58, 3e+38 }
 0x316   :  { %v612_v3 = vpop.permute.xlu0 %611 }
 0x317   :  { %v681_v33 = vsel %vm1715_vm4, %v612_v3, -3e+38  ;;  %v718_v34 = vsel %vm1715_vm4, %v612_v3, 3e+38 }
 0x31a   :  { %v617_v5 = vpop.permute.xlu0 %616 }
 0x31b   :  { %v682_v19 = vsel %vm1719_vm5, %v617_v5, -3e+38  ;;  %v719_v42 = vsel %vm1719_vm5, %v617_v5, 3e+38 }
 0x31e   :  { %v622_v12 = vpop.permute.xlu0 %621 }
 0x31f   :  { %v683_v37 = vsel %vm1726_vm6, %v622_v12, -3e+38  ;;  %v720_v49 = vsel %vm1726_vm6, %v622_v12, 3e+38 }
 0x320   :  { %v695_v47 = vmax.f32 %v679_v26, %v683_v37  ;;  %v732_v48 = vmin.f32 %v716_v0, %v720_v49 }
 0x322   :  { %v627_v1 = vpop.permute.xlu0 %626 }
 0x323   :  { %v684_v38 = vsel %vm1730_vm7, %v627_v1, -3e+38  ;;  %v721_v39 = vsel %vm1730_vm7, %v627_v1, 3e+38 }
 0x324   :  { %v696_v50 = vmax.f32 %v680_v30, %v684_v38  ;;  %v733_v52 = vmin.f32 %v717_v27, %v721_v39 }
 0x326   :  { %v632_v59 = vpop.permute.xlu0 %631 }
 0x327   :  { %v685_v40 = vsel %vm1734_vm8, %v632_v59, -3e+38  ;;  %v722_v41 = vsel %vm1734_vm8, %v632_v59, 3e+38 }
 0x328   :  { %v697_v53 = vmax.f32 %v681_v33, %v685_v40  ;;  %v734_v55 = vmin.f32 %v718_v34, %v722_v41 }
 0x32a   :  { %v637_v14 = vpop.permute.xlu0 %636 }
 0x32b   :  { %v686_v45 = vsel %vm1738_vm9, %v637_v14, -3e+38  ;;  %v723_v35 = vsel %vm1738_vm9, %v637_v14, 3e+38 }
 0x32c   :  { %v698_v57 = vmax.f32 %v682_v19, %v686_v45  ;;  %v735_v60 = vmin.f32 %v719_v42, %v723_v35 }
 0x32e   :  { %v642_v4 = vpop.permute.xlu0 %641 }
 0x32f   :  { %v687_v51 = vsel %vm1742_vm10, %v642_v4, -3e+38  ;;  %v724_v56 = vsel %vm1742_vm10, %v642_v4, 3e+38 }
 0x330   :  { %v699_v62 = vmax.f32 %v695_v47, %v687_v51  ;;  %v736_v12 = vmin.f32 %v732_v48, %v724_v56 }
 0x332   :  { %v647_v16 = vpop.permute.xlu0 %646 }
 0x333   :  { %v688_v61 = vsel %vm1746_vm11, %v647_v16, -3e+38  ;;  %v725_v54 = vsel %vm1746_vm11, %v647_v16, 3e+38 }
 0x334   :  { %v700_v4 = vmax.f32 %v696_v50, %v688_v61  ;;  %v737_v16 = vmin.f32 %v733_v52, %v725_v54 }
 0x336   :  { %v652_v6 = vpop.permute.xlu0 %651 }
 0x337   :  { %v689_v2 = vsel %vm1750_vm12, %v652_v6, -3e+38  ;;  %v726_v58 = vsel %vm1750_vm12, %v652_v6, 3e+38 }
 0x338   :  { %v701_v26 = vmax.f32 %v697_v53, %v689_v2  ;;  %v738_v0 = vmin.f32 %v734_v55, %v726_v58  ;;  %v486_v58 = vstv %s1084_s20 }
 0x33a   :  { %v657_v9 = vpop.permute.xlu0 %656 }
 0x33b   :  { %v690_v3 = vsel %vm1758_vm13, %v657_v9, -3e+38  ;;  %v727_v1 = vsel %vm1758_vm13, %v657_v9, 3e+38 }
 0x33c   :  { %v702_v27 = vmax.f32 %v698_v57, %v690_v3  ;;  %v739_v33 = vmin.f32 %v735_v60, %v727_v1  ;;  %v484_v57 = vstv %s1083_s19  ;;  %v755_v1 = vstv %s1094_s21 }
 0x33d   :  { %v485_v2 = vmul.f32 %v484_v57, %v1871_v44 }
 0x33e   :  { %v662_v11 = vpop.permute.xlu0 %661 }
 0x33f   :  { %v691_v17 = vsel %vm1762_vm14, %v662_v11, -3e+38  ;;  %v728_v6 = vsel %vm1762_vm14, %v662_v11, 3e+38 }
 0x340   :  { %v703_v49 = vmax.f32 %v699_v62, %v691_v17  ;;  %v740_v38 = vmin.f32 %v736_v12, %v728_v6  ;;  %v566_v12 = vmul.f32 %v1861_v15, %v1873_v63  ;;  %v765_v17 = vstv %s1089_s23 }
 0x341   :  { %v767_v63 = vstv %s1090_s25 }
 0x342   :  { %v667_v46 = vpop.permute.xlu0 %666 }
 0x343   :  { %v692_v59 = vsel %vm1766_vm15, %v667_v46, -3e+38  ;;  %v729_v14 = vsel %vm1766_vm15, %v667_v46, 3e+38 }
 0x344   :  { %v704_v34 = vmax.f32 %v700_v4, %v692_v59  ;;  %v741_v19 = vmin.f32 %v737_v16, %v729_v14  ;;  %v757_v4 = vstv %s1095_s22  ;;  %v487_v16 = vadd.f32 %v486_v58, %v485_v2 }
 0x346   :  { %v672_v5 = vpop.permute.xlu0 %671  ;;  %v707_v35 = vmax.f32 %v703_v49, %v704_v34  ;;  %v744_v46 = vmin.f32 %v740_v38, %v741_v19  ;;  %v763_v34 = vstv %s1093_s26 }
 0x347   :  { %v693_v30 = vsel %vm1779_vm0, %v672_v5, -3e+38  ;;  %v730_v9 = vsel %vm1779_vm0, %v672_v5, 3e+38 }
 0x348   :  { %v705_v40 = vmax.f32 %v701_v26, %v693_v30  ;;  %v742_v41 = vmin.f32 %v738_v0, %v730_v9  ;;  %v760_v26 = vstv %s1096_s24  ;;  %v756_v0 = vmul.f32 %v755_v1, %v566_v12 }
 0x349   :  { %v766_v9 = vmul.f32 %v765_v17, %v487_v16 }
 0x34a   :  { %v677_v37 = vpop.permute.xlu0 %676 }
 0x34b   :  { %v694_v39 = vsel %vm2076_vm1, %v677_v37, -3e+38  ;;  %v731_v11 = vsel %vm2076_vm1, %v677_v37, 3e+38  ;;  %vm2077_vm1 = vcmp.gt.f32.partialorder %v1670_v31, 0.0  ;;  %v768_v49 = vadd.f32 %v767_v63, %v766_v9 }
 0x34c   :  { %v706_v42 = vmax.f32 %v702_v27, %v694_v39  ;;  %v743_v45 = vmin.f32 %v739_v33, %v731_v11  ;;  %vm2078_vm0 = vmmov %vm2077_vm1 }
 0x34e   :  { %v708_v47 = vmax.f32 %v705_v40, %v706_v42  ;;  %v745_v48 = vmin.f32 %v742_v41, %v743_v45 }
 0x350   :  { %v709_v50 = vmax.f32 %v707_v35, %v708_v47  ;;  %v746_v51 = vmin.f32 %v744_v46, %v745_v48 }
 0x352   :  { %v710_v52 = vrot.slane %v709_v50, 4  ;;  %v747_v53 = vrot.slane %v746_v51, 4 }
 0x354   :  { %v711_v55 = vmax.f32 %v709_v50, %v710_v52  ;;  %v748_v56 = vmin.f32 %v746_v51, %v747_v53 }
 0x356   :  { %v712_v60 = vrot.slane %v711_v55, 2  ;;  %v749_v61 = vrot.slane %v748_v56, 2 }
 0x358   :  { %v713_v54 = vmax.f32 %v711_v55, %v712_v60  ;;  %v750_v62 = vmin.f32 %v748_v56, %v749_v61 }
 0x35a   :  { %v714_v3 = vrot.slane %v713_v54, 1  ;;  %v751_v5 = vrot.slane %v750_v62, 1 }
 0x35c   :  { %v715_v59 = vmax.f32 %v713_v54, %v714_v3  ;;  %v752_v14 = vmin.f32 %v750_v62, %v751_v5 }
 0x35e   :  { %v753_v6 = vsel %vm2077_vm1, %v715_v59, 0.0  ;;  %v754_v44 = vsel %vm2078_vm0, %v752_v14, 0.0 }
 0x35f   :  { %v758_v30 = vmul.f32 %v757_v4, %v753_v6  ;;  %v761_v33 = vmul.f32 %v760_v26, %v754_v44 }
 0x361   :  { %v759_v27 = vadd.f32 %v758_v30, %v756_v0 }
 0x363   :  { %v762_v19 = vadd.f32 %v761_v33, %v759_v27 }
 0x365   :  { %v764_v37 = vadd.f32 %v763_v34, %v762_v19 }
 0x367   :  { %853 = vxpose.xlu1.b32.start.end [1/1] (short) %v764_v37, 128  ;;  %v1946_v38 = vadd.f32 %v768_v49, %v764_v37  ;;  %1350 = vmatmul.mubr.f32.vlgmr.msra.gmra.mrb[2].mxu1 %v764_v37 }
 0x3e7   :  { %v869_v39 = vpop.trf.xlu1 }
 0x3e8   :  { %887 = vperm.xlu0 %1458, %v869_v39  }
 0x3eb   :  { %v870_v11 = vpop.trf.xlu1 }
 0x3ec   :  { %892 = vperm.xlu0 %1458, %v870_v11  }
 0x3ef   :  { %v871_v40 = vpop.trf.xlu1 }
 0x3f0   :  { %897 = vperm.xlu0 %1458, %v871_v40  }
 0x3f3   :  { %v872_v41 = vpop.trf.xlu1 }
 0x3f4   :  { %902 = vperm.xlu0 %1458, %v872_v41  }
 0x3f7   :  { %v873_v42 = vpop.trf.xlu1 }
 0x3f8   :  { %907 = vperm.xlu0 %1458, %v873_v42  }
 0x3fb   :  { %v874_v45 = vpop.trf.xlu1 }
 0x3fc   :  { %912 = vperm.xlu0 %1458, %v874_v45  }
 0x3ff   :  { %v875_v35 = vpop.trf.xlu1 }
 0x400   :  { %917 = vperm.xlu0 %1458, %v875_v35  }
 0x403   :  { %v876_v46 = vpop.trf.xlu1 }
 0x404   :  { %922 = vperm.xlu0 %1458, %v876_v46  }
 0x407   :  { %v877_v47 = vpop.trf.xlu1 }
 0x408   :  { %927 = vperm.xlu0 %1458, %v877_v47  }
 0x40b   :  { %v878_v48 = vpop.trf.xlu1 }
 0x40c   :  { %932 = vperm.xlu0 %1458, %v878_v48  }
 0x40f   :  { %v879_v50 = vpop.trf.xlu1 }
 0x410   :  { %937 = vperm.xlu1 %1459, %v879_v50  }
 0x413   :  { %v880_v51 = vpop.trf.xlu1 }
 0x414   :  { %942 = vperm.xlu0 %1458, %v880_v51  }
 0x417   :  { %v881_v52 = vpop.trf.xlu1 }
 0x418   :  { %947 = vperm.xlu0 %1458, %v881_v52  }
 0x41b   :  { %v882_v53 = vpop.trf.xlu1 }
 0x41c   :  { %952 = vperm.xlu0 %1458, %v882_v53  }
 0x41f   :  { %v883_v55 = vpop.trf.xlu1 }
 0x420   :  { %957 = vperm.xlu0 %1458, %v883_v55  }
 0x423   :  { %v884_v56 = vpop.trf.xlu1 }
 0x424   :  { %962 = vperm.xlu0 %1458, %v884_v56  }
 0x43a   :  { %v1948_v57 = vpop.f32.mrb[2].mxu1 }
 0x43b   :  { %v1351_v60 = vpop.f32.mrb[3].mxu1 }
 0x467   :  { %v888_v61 = vpop.permute.xlu0 %887 }
 0x468   :  { %v965_v4 = vsel %vm1700_vm2, %v888_v61, -3e+38  ;;  %v1002_v16 = vsel %vm1700_vm2, %v888_v61, 3e+38  ;;  %vm2079_vm2 = vnez %v2073_v36 }
 0x46b   :  { %v893_v54 = vpop.permute.xlu0 %892 }
 0x46c   :  { %v966_v17 = vsel %vm1711_vm3, %v893_v54, -3e+38  ;;  %v1003_v6 = vsel %vm1711_vm3, %v893_v54, 3e+38  ;;  %vm2080_vm3 = vnez %v2075_v43 }
 0x46f   :  { %v898_v62 = vpop.permute.xlu0 %897 }
 0x470   :  { %v967_v26 = vsel %vm1715_vm4, %v898_v62, -3e+38  ;;  %v1004_v0 = vsel %vm1715_vm4, %v898_v62, 3e+38  ;;  %vm2081_vm4 = vmmov %vm2078_vm0 }
 0x473   :  { %v903_v2 = vpop.permute.xlu0 %902 }
 0x474   :  { %v968_v30 = vsel %vm1719_vm5, %v903_v2, -3e+38  ;;  %v1005_v34 = vsel %vm1719_vm5, %v903_v2, 3e+38  ;;  %vm2082_vm5 = vmmov %vm2078_vm0 }
 0x477   :  { %v908_v58 = vpop.permute.xlu0 %907 }
 0x478   :  { %v969_v13 = vsel %vm1726_vm6, %v908_v58, -3e+38  ;;  %v1006_v9 = vsel %vm1726_vm6, %v908_v58, 3e+38 }
 0x479   :  { %v981_v37 = vmax.f32 %v965_v4, %v969_v13  ;;  %v1018_v49 = vmin.f32 %v1002_v16, %v1006_v9 }
 0x47b   :  { %v913_v3 = vpop.permute.xlu0 %912 }
 0x47c   :  { %v970_v7 = vsel %vm1730_vm7, %v913_v3, -3e+38  ;;  %v1007_v27 = vsel %vm1730_vm7, %v913_v3, 3e+38 }
 0x47d   :  { %v982_v10 = vmax.f32 %v966_v17, %v970_v7  ;;  %v1019_v40 = vmin.f32 %v1003_v6, %v1007_v27 }
 0x47f   :  { %v918_v5 = vpop.permute.xlu0 %917 }
 0x480   :  { %v971_v33 = vsel %vm1734_vm8, %v918_v5, -3e+38  ;;  %v1008_v18 = vsel %vm1734_vm8, %v918_v5, 3e+38 }
 0x481   :  { %v983_v21 = vmax.f32 %v967_v26, %v971_v33  ;;  %v1020_v41 = vmin.f32 %v1004_v0, %v1008_v18  ;;  %v770_v18 = vstv %s1091_s27 }
 0x483   :  { %v923_v12 = vpop.permute.xlu0 %922 }
 0x484   :  { %v972_v63 = vsel %vm1738_vm9, %v923_v12, -3e+38  ;;  %v1009_v20 = vsel %vm1738_vm9, %v923_v12, 3e+38 }
 0x485   :  { %v984_v42 = vmax.f32 %v968_v30, %v972_v63  ;;  %v1021_v45 = vmin.f32 %v1005_v34, %v1009_v20  ;;  %v771_v20 = vmul.f32 %v770_v18, %v1946_v38 }
 0x487   :  { %v928_v1 = vpop.permute.xlu0 %927 }
 0x488   :  { %v973_v39 = vsel %vm1742_vm10, %v928_v1, -3e+38  ;;  %v1010_v8 = vsel %vm1742_vm10, %v928_v1, 3e+38 }
 0x489   :  { %v985_v46 = vmax.f32 %v981_v37, %v973_v39  ;;  %v1022_v51 = vmin.f32 %v1018_v49, %v1010_v8  ;;  %v772_v49 = vstv %s1092_s3  ;;  %v1041_v39 = vstv %s1102_s28 }
 0x48b   :  { %v933_v59 = vpop.permute.xlu0 %932 }
 0x48c   :  { %v974_v22 = vsel %vm1746_vm11, %v933_v59, -3e+38  ;;  %v1011_v35 = vsel %vm1746_vm11, %v933_v59, 3e+38 }
 0x48d   :  { %v986_v55 = vmax.f32 %v982_v10, %v974_v22  ;;  %v1023_v56 = vmin.f32 %v1019_v40, %v1011_v35  ;;  %v852_v10 = vmul.f32 %v1861_v15, %v1948_v57  ;;  %v1049_v57 = vstv %s1101_s7 }
 0x48f   :  { %v938_v11 = vpop.permute.xlu1 %937  ;;  %v1042_v22 = vmul.f32 %v1041_v39, %v852_v10 }
 0x490   :  { %v975_v47 = vsel %vm1750_vm12, %v938_v11, -3e+38  ;;  %v1012_v48 = vsel %vm1750_vm12, %v938_v11, 3e+38 }
 0x491   :  { %v987_v61 = vmax.f32 %v983_v21, %v975_v47  ;;  %v1024_v54 = vmin.f32 %v1020_v41, %v1012_v48  ;;  %v1043_v21 = vstv %s1103_s29  ;;  %v773_v41 = vadd.f32 %v772_v49, %v771_v20 }
 0x492   :  { %v1053_v48 = vstv %s1098_s6 }
 0x493   :  { %v943_v14 = vpop.permute.xlu0 %942 }
 0x494   :  { %v976_v50 = vsel %vm1758_vm13, %v943_v14, -3e+38  ;;  %v1013_v52 = vsel %vm1758_vm13, %v943_v14, 3e+38 }
 0x495   :  { %v988_v2 = vmax.f32 %v984_v42, %v976_v50  ;;  %v1025_v58 = vmin.f32 %v1021_v45, %v1013_v52  ;;  %v1046_v42 = vstv %s1104_s5  ;;  %v1051_v45 = vstv %s1097_s30 }
 0x496   :  { %v1052_v15 = vmul.f32 %v1051_v45, %v773_v41  ;;  %v1056_v52 = vstv %s1099_s8 }
 0x497   :  { %v948_v44 = vpop.permute.xlu0 %947 }
 0x498   :  { %v977_v25 = vsel %vm1762_vm14, %v948_v44, -3e+38  ;;  %v1014_v60 = vsel %vm1762_vm14, %v948_v44, 3e+38 }
 0x499   :  { %v989_v12 = vmax.f32 %v985_v46, %v977_v25  ;;  %v1026_v1 = vmin.f32 %v1022_v51, %v1014_v60  ;;  %v1054_v51 = vadd.f32 %v1053_v48, %v1052_v15 }
 0x49b   :  { %v953_v19 = vpop.permute.xlu0 %952 }
 0x49c   :  { %v978_v53 = vsel %vm1766_vm15, %v953_v19, -3e+38  ;;  %v1015_v24 = vsel %vm1766_vm15, %v953_v19, 3e+38 }
 0x49d   :  { %v990_v32 = vmax.f32 %v986_v55, %v978_v53  ;;  %v1027_v3 = vmin.f32 %v1023_v56, %v1015_v24  ;;  %v1058_v24 = vstv %s1100_s1 }
 0x49f   :  { %v958_v23 = vpop.permute.xlu0 %957  ;;  %v993_v6 = vmax.f32 %v989_v12, %v990_v32  ;;  %v1030_v36 = vmin.f32 %v1026_v1, %v1027_v3 }
 0x4a0   :  { %v979_v28 = vsel %vm2079_vm2, %v958_v23, -3e+38  ;;  %v1016_v62 = vsel %vm2079_vm2, %v958_v23, 3e+38 }
 0x4a1   :  { %v991_v14 = vmax.f32 %v987_v61, %v979_v28  ;;  %v1028_v4 = vmin.f32 %v1024_v54, %v1016_v62 }
 0x4a3   :  { %v963_v5 = vpop.permute.xlu0 %962 }
 0x4a4   :  { %v980_v59 = vsel %vm2080_vm3, %v963_v5, -3e+38  ;;  %v1017_v29 = vsel %vm2080_vm3, %v963_v5, 3e+38 }
 0x4a5   :  { %v992_v16 = vmax.f32 %v988_v2, %v980_v59  ;;  %v1029_v17 = vmin.f32 %v1025_v58, %v1017_v29 }
 0x4a7   :  { %v994_v44 = vmax.f32 %v991_v14, %v992_v16  ;;  %v1031_v26 = vmin.f32 %v1028_v4, %v1029_v17 }
 0x4a9   :  { %v995_v0 = vmax.f32 %v993_v6, %v994_v44  ;;  %v1032_v30 = vmin.f32 %v1030_v36, %v1031_v26 }
 0x4ab   :  { %v996_v13 = vrot.slane %v995_v0, 4  ;;  %v1033_v9 = vrot.slane %v1032_v30, 4 }
 0x4ad   :  { %v997_v7 = vmax.f32 %v995_v0, %v996_v13  ;;  %v1034_v27 = vmin.f32 %v1032_v30, %v1033_v9 }
 0x4af   :  { %v998_v43 = vrot.slane %v997_v7, 2  ;;  %v1035_v33 = vrot.slane %v1034_v27, 2 }
 0x4b1   :  { %v999_v34 = vmax.f32 %v997_v7, %v998_v43  ;;  %v1036_v63 = vmin.f32 %v1034_v27, %v1035_v33 }
 0x4b3   :  { %v1000_v19 = vrot.slane %v999_v34, 1  ;;  %v1037_v37 = vrot.slane %v1036_v63, 1 }
 0x4b5   :  { %v1001_v11 = vmax.f32 %v999_v34, %v1000_v19  ;;  %v1038_v40 = vmin.f32 %v1036_v63, %v1037_v37 }
 0x4b7   :  { %v1039_v8 = vsel %vm2081_vm4, %v1001_v11, 0.0  ;;  %v1040_v38 = vsel %vm2082_vm5, %v1038_v40, 0.0 }
 0x4b8   :  { %v1044_v35 = vmul.f32 %v1043_v21, %v1039_v8  ;;  %v1047_v47 = vmul.f32 %v1046_v42, %v1040_v38 }
 0x4ba   :  { %v1045_v46 = vadd.f32 %v1044_v35, %v1042_v22 }
 0x4bc   :  { %v1048_v50 = vadd.f32 %v1047_v47, %v1045_v46 }
 0x4be   :  { %v1050_v23 = vadd.f32 %v1049_v57, %v1048_v50 }
 0x4c0   :  { %v1055_v53 = vadd.f32 %v1054_v51, %v1050_v23 }
 0x4c2   :  { %v1057_v31 = vmul.f32 %v1056_v52, %v1055_v53 }
 0x4c4   :  { %v1059_v55 = vadd.f32 %v1058_v24, %v1057_v31 }
 0x4c6   :  { %1060 = vst [vmem:[#allocation7] sm:$0x1] %v1059_v55 }
 0x4c7   :  { %1507 = shalt.err (!%p1504_p3)
}
 0x4c8   :  { %s1508_s13 = scalar_lea.hbm %s2037_s4, 16 }
 0x4c9   :  { %p1509_p4 = scmp.ne.s32.totalorder %s2037_s4, %s1508_s13  ;;  %p1512_p5 = scmp.lt.u32.totalorder %s1508_s13, %s2037_s4 }
 0x4cb   :  { %p1514_p6 = pnand %p1512_p5, %p1509_p4 }
 0x4cd   :  { %1517 = shalt.err (!%p1514_p6)
}
 0x4ce   :  { %1070 = dma.vmem_to_hbm [thread:$0]  %s1068_s9, 16, %s2037_s4, [#allocation4]  }
 0x4cf   :  { %1522 = dma.done.wait [#allocation4], 16  }
 0x4d0   :  { %1523 = vsyncadd [#allocation4], 4294967280 }
 0x4d1   :  { %1074 = vsyncpa [#allocation3], 1 }
 0x4d2   :  { %1075 = vsyncpa [#allocation4], 1 }
 0x4d3   :  { %1076 = vsyncpa [#allocation5], 1 }

</bundles_post_ra>
